<compile_context>
chip_gen: v5e
topology: v5e:2x2
jax: 0.10.0
libtpu: 0.0.40
codegen_flags: <defaults>
</compile_context>

<pallas_src>
import jax
import jax.numpy as jnp
from jax.experimental import pallas as pl
from jax.experimental.pallas import tpu as pltpu

HIDDEN = 20
ROWS_PER_TILE = 64  # 64 rows x 128 lanes = 8192 batch elements per grid step


def mlp_kernel(p_ref, x_ref, o_ref):
    """p_ref: SMEM f32[61] = [w1(20) | b1(20) | w2(20) | b2(1)]  (PyTorch values)
    x_ref / o_ref: VMEM (TR, 128) batch tile (batch element per lane/sublane)."""
    x = x_ref[...]
    acc = jnp.zeros_like(x)
    # Statically unrolled over the 20 hidden units: scalar-broadcast mul/add/max
    # on the VPU, accumulate the output contraction on the fly (no big temp).
    for k in range(HIDDEN):
        h = jnp.maximum(p_ref[k] * x + p_ref[HIDDEN + k], 0.0)
        acc = acc + h * p_ref[2 * HIDDEN + k]
    o_ref[...] = (acc + p_ref[3 * HIDDEN]).astype(o_ref.dtype)


def pack_params(w_hidden, b_hidden, w_predict, b_predict):
    """Pack PyTorch-convention params into one flat f32[61] array.
    w_hidden: (20, 1) = hidden.weight (out, in), b_hidden: (20,) = hidden.bias,
    w_predict: (1, 20) = predict.weight,          b_predict: (1,) = predict.bias."""
    return jnp.concatenate(
        [w_hidden.reshape(HIDDEN),
         b_hidden.reshape(HIDDEN),
         w_predict.reshape(HIDDEN),
         b_predict.reshape(1)]
    ).astype(jnp.float32)


def net_forward(x, params):
    """x: (N, 1) float32, params: f32[61] (from pack_params) -> (N, 1) float32."""
    n = x.shape[0]

    # Batch rows of 128 lanes; full sublane groups (multiple of 8 rows).
    rows = -(-n // 128)
    rows = -(-rows // 8) * 8
    if rows > ROWS_PER_TILE:
        tile_rows = ROWS_PER_TILE
        rows = -(-rows // tile_rows) * tile_rows
    else:
        tile_rows = rows
    n_pad = rows * 128

    # Single fused relayout: flatten + pad + reshape to (rows, 128).
    x_tiles = jnp.pad(x.reshape(-1), (0, n_pad - n)).reshape(rows, 128)

    # ~100 flops per element (20 x (mul+add+relu+mul+add)); f32 in + f32 out.
    cost = pl.CostEstimate(
        flops=100 * n_pad,
        transcendentals=0,
        bytes_accessed=8 * n_pad + 61 * 4,
    )

    out_tiles = pl.pallas_call(
        mlp_kernel,
        out_shape=jax.ShapeDtypeStruct((rows, 128), jnp.float32),
        grid=(rows // tile_rows,),
        in_specs=[
            pl.BlockSpec(memory_space=pltpu.MemorySpace.SMEM),      # packed params
            pl.BlockSpec((tile_rows, 128), lambda i: (i, 0)),       # x batch tile
        ],
        out_specs=pl.BlockSpec((tile_rows, 128), lambda i: (i, 0)),
        compiler_params=pltpu.CompilerParams(
            dimension_semantics=("parallel",)),
        cost_estimate=cost,
    )(params, x_tiles)

    # Padded lanes hold relu(b1)*w2+b2 garbage; sliced off here.
    return out_tiles.reshape(-1)[:n][:, None]


def init_params(key):
    """nn.Linear-style U(-1/sqrt(fan_in), 1/sqrt(fan_in)) init, PyTorch layout."""
    k1, k2, k3, k4 = jax.random.split(key, 4)
    bound1 = 1.0  # fan_in = 1
    w_hidden = jax.random.uniform(k1, (HIDDEN, 1), jnp.float32, -bound1, bound1)
    b_hidden = jax.random.uniform(k2, (HIDDEN,), jnp.float32, -bound1, bound1)
    bound2 = 1.0 / jnp.sqrt(float(HIDDEN))
    w_predict = jax.random.uniform(k3, (1, HIDDEN), jnp.float32, -bound2, bound2)
    b_predict = jax.random.uniform(k4, (1,), jnp.float32, -bound2, bound2)
    return w_hidden, b_hidden, w_predict, b_predict


if __name__ == "__main__":
    key = jax.random.PRNGKey(0)
    w_hidden, b_hidden, w_predict, b_predict = init_params(key)
    params = pack_params(w_hidden, b_hidden, w_predict, b_predict)

    # Same input as the tutorial: 1000 points in [-1, 1], shape (1000, 1).
    x = jnp.linspace(-1.0, 1.0, 1000, dtype=jnp.float32)[:, None]

    out = net_forward(x, params)
    out = jax.block_until_ready(out)

    # Pure-JAX reference with PyTorch Linear semantics: y = x @ W^T + b
    ref = jnp.maximum(x @ w_hidden.T + b_hidden, 0.0) @ w_predict.T + b_predict
    assert out.shape == (1000, 1)
    assert jnp.allclose(out, ref, atol=1e-5), "mismatch vs reference"

    # TODO(synk): optimizer/training loop of the tutorial is out of scope for a
    # forward-pass kernel (no Pallas equivalent needed here).
    print("KERNEL_OK")
</pallas_src>

<mosaic_0001>
module attributes {stable_mosaic.version = 11 : i64} {
  func.func @mlp_kernel(%arg0: i32, %arg1: memref<61xf32, #tpu.memory_space<smem>>, %arg2: memref<8x128xf32, #tpu.memory_space<vmem>>, %arg3: memref<8x128xf32, #tpu.memory_space<vmem>>) attributes {dimension_semantics = [#tpu.dimension_semantics<parallel>], iteration_bounds = array<i64: 1>, scalar_prefetch = 0 : i64, scratch_operands = 0 : i64, tpu.core_type = #tpu.core_type<tc>, window_params = [{transform_indices = @transform_0, window_bounds = array<i64: 61>}, {transform_indices = @transform_1, window_bounds = array<i64: 8, 128>}, {transform_indices = @transform_2, window_bounds = array<i64: 8, 128>}]} {
    %c0 = arith.constant 0 : index
    %c0_0 = arith.constant 0 : index
    %0 = vector.load %arg2[%c0, %c0_0] : memref<8x128xf32, #tpu.memory_space<vmem>>, vector<8x128xf32>
    %cst = arith.constant 0.000000e+00 : f32
    %1 = vector.broadcast %cst : f32 to vector<8x128xf32>
    %c0_1 = arith.constant 0 : index
    %2 = memref.load %arg1[%c0_1] : memref<61xf32, #tpu.memory_space<smem>>
    %3 = vector.broadcast %2 : f32 to vector<8x128xf32>
    %4 = arith.mulf %3, %0 : vector<8x128xf32>
    %c20 = arith.constant 20 : index
    %5 = memref.load %arg1[%c20] : memref<61xf32, #tpu.memory_space<smem>>
    %6 = vector.broadcast %5 : f32 to vector<8x128xf32>
    %7 = arith.addf %4, %6 : vector<8x128xf32>
    %cst_2 = arith.constant 0.000000e+00 : f32
    %8 = vector.broadcast %cst_2 : f32 to vector<8x128xf32>
    %9 = arith.maximumf %7, %8 : vector<8x128xf32>
    %c40 = arith.constant 40 : index
    %10 = memref.load %arg1[%c40] : memref<61xf32, #tpu.memory_space<smem>>
    %11 = vector.broadcast %10 : f32 to vector<8x128xf32>
    %12 = arith.mulf %9, %11 : vector<8x128xf32>
    %13 = arith.addf %1, %12 : vector<8x128xf32>
    %c1 = arith.constant 1 : index
    %14 = memref.load %arg1[%c1] : memref<61xf32, #tpu.memory_space<smem>>
    %15 = vector.broadcast %14 : f32 to vector<8x128xf32>
    %16 = arith.mulf %15, %0 : vector<8x128xf32>
    %c21 = arith.constant 21 : index
    %17 = memref.load %arg1[%c21] : memref<61xf32, #tpu.memory_space<smem>>
    %18 = vector.broadcast %17 : f32 to vector<8x128xf32>
    %19 = arith.addf %16, %18 : vector<8x128xf32>
    %cst_3 = arith.constant 0.000000e+00 : f32
    %20 = vector.broadcast %cst_3 : f32 to vector<8x128xf32>
    %21 = arith.maximumf %19, %20 : vector<8x128xf32>
    %c41 = arith.constant 41 : index
    %22 = memref.load %arg1[%c41] : memref<61xf32, #tpu.memory_space<smem>>
    %23 = vector.broadcast %22 : f32 to vector<8x128xf32>
    %24 = arith.mulf %21, %23 : vector<8x128xf32>
    %25 = arith.addf %13, %24 : vector<8x128xf32>
    %c2 = arith.constant 2 : index
    %26 = memref.load %arg1[%c2] : memref<61xf32, #tpu.memory_space<smem>>
    %27 = vector.broadcast %26 : f32 to vector<8x128xf32>
    %28 = arith.mulf %27, %0 : vector<8x128xf32>
    %c22 = arith.constant 22 : index
    %29 = memref.load %arg1[%c22] : memref<61xf32, #tpu.memory_space<smem>>
    %30 = vector.broadcast %29 : f32 to vector<8x128xf32>
    %31 = arith.addf %28, %30 : vector<8x128xf32>
    %cst_4 = arith.constant 0.000000e+00 : f32
    %32 = vector.broadcast %cst_4 : f32 to vector<8x128xf32>
    %33 = arith.maximumf %31, %32 : vector<8x128xf32>
    %c42 = arith.constant 42 : index
    %34 = memref.load %arg1[%c42] : memref<61xf32, #tpu.memory_space<smem>>
    %35 = vector.broadcast %34 : f32 to vector<8x128xf32>
    %36 = arith.mulf %33, %35 : vector<8x128xf32>
    %37 = arith.addf %25, %36 : vector<8x128xf32>
    %c3 = arith.constant 3 : index
    %38 = memref.load %arg1[%c3] : memref<61xf32, #tpu.memory_space<smem>>
    %39 = vector.broadcast %38 : f32 to vector<8x128xf32>
    %40 = arith.mulf %39, %0 : vector<8x128xf32>
    %c23 = arith.constant 23 : index
    %41 = memref.load %arg1[%c23] : memref<61xf32, #tpu.memory_space<smem>>
    %42 = vector.broadcast %41 : f32 to vector<8x128xf32>
    %43 = arith.addf %40, %42 : vector<8x128xf32>
    %cst_5 = arith.constant 0.000000e+00 : f32
    %44 = vector.broadcast %cst_5 : f32 to vector<8x128xf32>
    %45 = arith.maximumf %43, %44 : vector<8x128xf32>
    %c43 = arith.constant 43 : index
    %46 = memref.load %arg1[%c43] : memref<61xf32, #tpu.memory_space<smem>>
    %47 = vector.broadcast %46 : f32 to vector<8x128xf32>
    %48 = arith.mulf %45, %47 : vector<8x128xf32>
    %49 = arith.addf %37, %48 : vector<8x128xf32>
    %c4 = arith.constant 4 : index
    %50 = memref.load %arg1[%c4] : memref<61xf32, #tpu.memory_space<smem>>
    %51 = vector.broadcast %50 : f32 to vector<8x128xf32>
    %52 = arith.mulf %51, %0 : vector<8x128xf32>
    %c24 = arith.constant 24 : index
    %53 = memref.load %arg1[%c24] : memref<61xf32, #tpu.memory_space<smem>>
    %54 = vector.broadcast %53 : f32 to vector<8x128xf32>
    %55 = arith.addf %52, %54 : vector<8x128xf32>
    %cst_6 = arith.constant 0.000000e+00 : f32
    %56 = vector.broadcast %cst_6 : f32 to vector<8x128xf32>
    %57 = arith.maximumf %55, %56 : vector<8x128xf32>
    %c44 = arith.constant 44 : index
    %58 = memref.load %arg1[%c44] : memref<61xf32, #tpu.memory_space<smem>>
    %59 = vector.broadcast %58 : f32 to vector<8x128xf32>
    %60 = arith.mulf %57, %59 : vector<8x128xf32>
    %61 = arith.addf %49, %60 : vector<8x128xf32>
    %c5 = arith.constant 5 : index
    %62 = memref.load %arg1[%c5] : memref<61xf32, #tpu.memory_space<smem>>
    %63 = vector.broadcast %62 : f32 to vector<8x128xf32>
    %64 = arith.mulf %63, %0 : vector<8x128xf32>
    %c25 = arith.constant 25 : index
    %65 = memref.load %arg1[%c25] : memref<61xf32, #tpu.memory_space<smem>>
    %66 = vector.broadcast %65 : f32 to vector<8x128xf32>
    %67 = arith.addf %64, %66 : vector<8x128xf32>
    %cst_7 = arith.constant 0.000000e+00 : f32
    %68 = vector.broadcast %cst_7 : f32 to vector<8x128xf32>
    %69 = arith.maximumf %67, %68 : vector<8x128xf32>
    %c45 = arith.constant 45 : index
    %70 = memref.load %arg1[%c45] : memref<61xf32, #tpu.memory_space<smem>>
    %71 = vector.broadcast %70 : f32 to vector<8x128xf32>
    %72 = arith.mulf %69, %71 : vector<8x128xf32>
    %73 = arith.addf %61, %72 : vector<8x128xf32>
    %c6 = arith.constant 6 : index
    %74 = memref.load %arg1[%c6] : memref<61xf32, #tpu.memory_space<smem>>
    %75 = vector.broadcast %74 : f32 to vector<8x128xf32>
    %76 = arith.mulf %75, %0 : vector<8x128xf32>
    %c26 = arith.constant 26 : index
    %77 = memref.load %arg1[%c26] : memref<61xf32, #tpu.memory_space<smem>>
    %78 = vector.broadcast %77 : f32 to vector<8x128xf32>
    %79 = arith.addf %76, %78 : vector<8x128xf32>
    %cst_8 = arith.constant 0.000000e+00 : f32
    %80 = vector.broadcast %cst_8 : f32 to vector<8x128xf32>
    %81 = arith.maximumf %79, %80 : vector<8x128xf32>
    %c46 = arith.constant 46 : index
    %82 = memref.load %arg1[%c46] : memref<61xf32, #tpu.memory_space<smem>>
    %83 = vector.broadcast %82 : f32 to vector<8x128xf32>
    %84 = arith.mulf %81, %83 : vector<8x128xf32>
    %85 = arith.addf %73, %84 : vector<8x128xf32>
    %c7 = arith.constant 7 : index
    %86 = memref.load %arg1[%c7] : memref<61xf32, #tpu.memory_space<smem>>
    %87 = vector.broadcast %86 : f32 to vector<8x128xf32>
    %88 = arith.mulf %87, %0 : vector<8x128xf32>
    %c27 = arith.constant 27 : index
    %89 = memref.load %arg1[%c27] : memref<61xf32, #tpu.memory_space<smem>>
    %90 = vector.broadcast %89 : f32 to vector<8x128xf32>
    %91 = arith.addf %88, %90 : vector<8x128xf32>
    %cst_9 = arith.constant 0.000000e+00 : f32
    %92 = vector.broadcast %cst_9 : f32 to vector<8x128xf32>
    %93 = arith.maximumf %91, %92 : vector<8x128xf32>
    %c47 = arith.constant 47 : index
    %94 = memref.load %arg1[%c47] : memref<61xf32, #tpu.memory_space<smem>>
    %95 = vector.broadcast %94 : f32 to vector<8x128xf32>
    %96 = arith.mulf %93, %95 : vector<8x128xf32>
    %97 = arith.addf %85, %96 : vector<8x128xf32>
    %c8 = arith.constant 8 : index
    %98 = memref.load %arg1[%c8] : memref<61xf32, #tpu.memory_space<smem>>
    %99 = vector.broadcast %98 : f32 to vector<8x128xf32>
    %100 = arith.mulf %99, %0 : vector<8x128xf32>
    %c28 = arith.constant 28 : index
    %101 = memref.load %arg1[%c28] : memref<61xf32, #tpu.memory_space<smem>>
    %102 = vector.broadcast %101 : f32 to vector<8x128xf32>
    %103 = arith.addf %100, %102 : vector<8x128xf32>
    %cst_10 = arith.constant 0.000000e+00 : f32
    %104 = vector.broadcast %cst_10 : f32 to vector<8x128xf32>
    %105 = arith.maximumf %103, %104 : vector<8x128xf32>
    %c48 = arith.constant 48 : index
    %106 = memref.load %arg1[%c48] : memref<61xf32, #tpu.memory_space<smem>>
    %107 = vector.broadcast %106 : f32 to vector<8x128xf32>
    %108 = arith.mulf %105, %107 : vector<8x128xf32>
    %109 = arith.addf %97, %108 : vector<8x128xf32>
    %c9 = arith.constant 9 : index
    %110 = memref.load %arg1[%c9] : memref<61xf32, #tpu.memory_space<smem>>
    %111 = vector.broadcast %110 : f32 to vector<8x128xf32>
    %112 = arith.mulf %111, %0 : vector<8x128xf32>
    %c29 = arith.constant 29 : index
    %113 = memref.load %arg1[%c29] : memref<61xf32, #tpu.memory_space<smem>>
    %114 = vector.broadcast %113 : f32 to vector<8x128xf32>
    %115 = arith.addf %112, %114 : vector<8x128xf32>
    %cst_11 = arith.constant 0.000000e+00 : f32
    %116 = vector.broadcast %cst_11 : f32 to vector<8x128xf32>
    %117 = arith.maximumf %115, %116 : vector<8x128xf32>
    %c49 = arith.constant 49 : index
    %118 = memref.load %arg1[%c49] : memref<61xf32, #tpu.memory_space<smem>>
    %119 = vector.broadcast %118 : f32 to vector<8x128xf32>
    %120 = arith.mulf %117, %119 : vector<8x128xf32>
    %121 = arith.addf %109, %120 : vector<8x128xf32>
    %c10 = arith.constant 10 : index
    %122 = memref.load %arg1[%c10] : memref<61xf32, #tpu.memory_space<smem>>
    %123 = vector.broadcast %122 : f32 to vector<8x128xf32>
    %124 = arith.mulf %123, %0 : vector<8x128xf32>
    %c30 = arith.constant 30 : index
    %125 = memref.load %arg1[%c30] : memref<61xf32, #tpu.memory_space<smem>>
    %126 = vector.broadcast %125 : f32 to vector<8x128xf32>
    %127 = arith.addf %124, %126 : vector<8x128xf32>
    %cst_12 = arith.constant 0.000000e+00 : f32
    %128 = vector.broadcast %cst_12 : f32 to vector<8x128xf32>
    %129 = arith.maximumf %127, %128 : vector<8x128xf32>
    %c50 = arith.constant 50 : index
    %130 = memref.load %arg1[%c50] : memref<61xf32, #tpu.memory_space<smem>>
    %131 = vector.broadcast %130 : f32 to vector<8x128xf32>
    %132 = arith.mulf %129, %131 : vector<8x128xf32>
    %133 = arith.addf %121, %132 : vector<8x128xf32>
    %c11 = arith.constant 11 : index
    %134 = memref.load %arg1[%c11] : memref<61xf32, #tpu.memory_space<smem>>
    %135 = vector.broadcast %134 : f32 to vector<8x128xf32>
    %136 = arith.mulf %135, %0 : vector<8x128xf32>
    %c31 = arith.constant 31 : index
    %137 = memref.load %arg1[%c31] : memref<61xf32, #tpu.memory_space<smem>>
    %138 = vector.broadcast %137 : f32 to vector<8x128xf32>
    %139 = arith.addf %136, %138 : vector<8x128xf32>
    %cst_13 = arith.constant 0.000000e+00 : f32
    %140 = vector.broadcast %cst_13 : f32 to vector<8x128xf32>
    %141 = arith.maximumf %139, %140 : vector<8x128xf32>
    %c51 = arith.constant 51 : index
    %142 = memref.load %arg1[%c51] : memref<61xf32, #tpu.memory_space<smem>>
    %143 = vector.broadcast %142 : f32 to vector<8x128xf32>
    %144 = arith.mulf %141, %143 : vector<8x128xf32>
    %145 = arith.addf %133, %144 : vector<8x128xf32>
    %c12 = arith.constant 12 : index
    %146 = memref.load %arg1[%c12] : memref<61xf32, #tpu.memory_space<smem>>
    %147 = vector.broadcast %146 : f32 to vector<8x128xf32>
    %148 = arith.mulf %147, %0 : vector<8x128xf32>
    %c32 = arith.constant 32 : index
    %149 = memref.load %arg1[%c32] : memref<61xf32, #tpu.memory_space<smem>>
    %150 = vector.broadcast %149 : f32 to vector<8x128xf32>
    %151 = arith.addf %148, %150 : vector<8x128xf32>
    %cst_14 = arith.constant 0.000000e+00 : f32
    %152 = vector.broadcast %cst_14 : f32 to vector<8x128xf32>
    %153 = arith.maximumf %151, %152 : vector<8x128xf32>
    %c52 = arith.constant 52 : index
    %154 = memref.load %arg1[%c52] : memref<61xf32, #tpu.memory_space<smem>>
    %155 = vector.broadcast %154 : f32 to vector<8x128xf32>
    %156 = arith.mulf %153, %155 : vector<8x128xf32>
    %157 = arith.addf %145, %156 : vector<8x128xf32>
    %c13 = arith.constant 13 : index
    %158 = memref.load %arg1[%c13] : memref<61xf32, #tpu.memory_space<smem>>
    %159 = vector.broadcast %158 : f32 to vector<8x128xf32>
    %160 = arith.mulf %159, %0 : vector<8x128xf32>
    %c33 = arith.constant 33 : index
    %161 = memref.load %arg1[%c33] : memref<61xf32, #tpu.memory_space<smem>>
    %162 = vector.broadcast %161 : f32 to vector<8x128xf32>
    %163 = arith.addf %160, %162 : vector<8x128xf32>
    %cst_15 = arith.constant 0.000000e+00 : f32
    %164 = vector.broadcast %cst_15 : f32 to vector<8x128xf32>
    %165 = arith.maximumf %163, %164 : vector<8x128xf32>
    %c53 = arith.constant 53 : index
    %166 = memref.load %arg1[%c53] : memref<61xf32, #tpu.memory_space<smem>>
    %167 = vector.broadcast %166 : f32 to vector<8x128xf32>
    %168 = arith.mulf %165, %167 : vector<8x128xf32>
    %169 = arith.addf %157, %168 : vector<8x128xf32>
    %c14 = arith.constant 14 : index
    %170 = memref.load %arg1[%c14] : memref<61xf32, #tpu.memory_space<smem>>
    %171 = vector.broadcast %170 : f32 to vector<8x128xf32>
    %172 = arith.mulf %171, %0 : vector<8x128xf32>
    %c34 = arith.constant 34 : index
    %173 = memref.load %arg1[%c34] : memref<61xf32, #tpu.memory_space<smem>>
    %174 = vector.broadcast %173 : f32 to vector<8x128xf32>
    %175 = arith.addf %172, %174 : vector<8x128xf32>
    %cst_16 = arith.constant 0.000000e+00 : f32
    %176 = vector.broadcast %cst_16 : f32 to vector<8x128xf32>
    %177 = arith.maximumf %175, %176 : vector<8x128xf32>
    %c54 = arith.constant 54 : index
    %178 = memref.load %arg1[%c54] : memref<61xf32, #tpu.memory_space<smem>>
    %179 = vector.broadcast %178 : f32 to vector<8x128xf32>
    %180 = arith.mulf %177, %179 : vector<8x128xf32>
    %181 = arith.addf %169, %180 : vector<8x128xf32>
    %c15 = arith.constant 15 : index
    %182 = memref.load %arg1[%c15] : memref<61xf32, #tpu.memory_space<smem>>
    %183 = vector.broadcast %182 : f32 to vector<8x128xf32>
    %184 = arith.mulf %183, %0 : vector<8x128xf32>
    %c35 = arith.constant 35 : index
    %185 = memref.load %arg1[%c35] : memref<61xf32, #tpu.memory_space<smem>>
    %186 = vector.broadcast %185 : f32 to vector<8x128xf32>
    %187 = arith.addf %184, %186 : vector<8x128xf32>
    %cst_17 = arith.constant 0.000000e+00 : f32
    %188 = vector.broadcast %cst_17 : f32 to vector<8x128xf32>
    %189 = arith.maximumf %187, %188 : vector<8x128xf32>
    %c55 = arith.constant 55 : index
    %190 = memref.load %arg1[%c55] : memref<61xf32, #tpu.memory_space<smem>>
    %191 = vector.broadcast %190 : f32 to vector<8x128xf32>
    %192 = arith.mulf %189, %191 : vector<8x128xf32>
    %193 = arith.addf %181, %192 : vector<8x128xf32>
    %c16 = arith.constant 16 : index
    %194 = memref.load %arg1[%c16] : memref<61xf32, #tpu.memory_space<smem>>
    %195 = vector.broadcast %194 : f32 to vector<8x128xf32>
    %196 = arith.mulf %195, %0 : vector<8x128xf32>
    %c36 = arith.constant 36 : index
    %197 = memref.load %arg1[%c36] : memref<61xf32, #tpu.memory_space<smem>>
    %198 = vector.broadcast %197 : f32 to vector<8x128xf32>
    %199 = arith.addf %196, %198 : vector<8x128xf32>
    %cst_18 = arith.constant 0.000000e+00 : f32
    %200 = vector.broadcast %cst_18 : f32 to vector<8x128xf32>
    %201 = arith.maximumf %199, %200 : vector<8x128xf32>
    %c56 = arith.constant 56 : index
    %202 = memref.load %arg1[%c56] : memref<61xf32, #tpu.memory_space<smem>>
    %203 = vector.broadcast %202 : f32 to vector<8x128xf32>
    %204 = arith.mulf %201, %203 : vector<8x128xf32>
    %205 = arith.addf %193, %204 : vector<8x128xf32>
    %c17 = arith.constant 17 : index
    %206 = memref.load %arg1[%c17] : memref<61xf32, #tpu.memory_space<smem>>
    %207 = vector.broadcast %206 : f32 to vector<8x128xf32>
    %208 = arith.mulf %207, %0 : vector<8x128xf32>
    %c37 = arith.constant 37 : index
    %209 = memref.load %arg1[%c37] : memref<61xf32, #tpu.memory_space<smem>>
    %210 = vector.broadcast %209 : f32 to vector<8x128xf32>
    %211 = arith.addf %208, %210 : vector<8x128xf32>
    %cst_19 = arith.constant 0.000000e+00 : f32
    %212 = vector.broadcast %cst_19 : f32 to vector<8x128xf32>
    %213 = arith.maximumf %211, %212 : vector<8x128xf32>
    %c57 = arith.constant 57 : index
    %214 = memref.load %arg1[%c57] : memref<61xf32, #tpu.memory_space<smem>>
    %215 = vector.broadcast %214 : f32 to vector<8x128xf32>
    %216 = arith.mulf %213, %215 : vector<8x128xf32>
    %217 = arith.addf %205, %216 : vector<8x128xf32>
    %c18 = arith.constant 18 : index
    %218 = memref.load %arg1[%c18] : memref<61xf32, #tpu.memory_space<smem>>
    %219 = vector.broadcast %218 : f32 to vector<8x128xf32>
    %220 = arith.mulf %219, %0 : vector<8x128xf32>
    %c38 = arith.constant 38 : index
    %221 = memref.load %arg1[%c38] : memref<61xf32, #tpu.memory_space<smem>>
    %222 = vector.broadcast %221 : f32 to vector<8x128xf32>
    %223 = arith.addf %220, %222 : vector<8x128xf32>
    %cst_20 = arith.constant 0.000000e+00 : f32
    %224 = vector.broadcast %cst_20 : f32 to vector<8x128xf32>
    %225 = arith.maximumf %223, %224 : vector<8x128xf32>
    %c58 = arith.constant 58 : index
    %226 = memref.load %arg1[%c58] : memref<61xf32, #tpu.memory_space<smem>>
    %227 = vector.broadcast %226 : f32 to vector<8x128xf32>
    %228 = arith.mulf %225, %227 : vector<8x128xf32>
    %229 = arith.addf %217, %228 : vector<8x128xf32>
    %c19 = arith.constant 19 : index
    %230 = memref.load %arg1[%c19] : memref<61xf32, #tpu.memory_space<smem>>
    %231 = vector.broadcast %230 : f32 to vector<8x128xf32>
    %232 = arith.mulf %231, %0 : vector<8x128xf32>
    %c39 = arith.constant 39 : index
    %233 = memref.load %arg1[%c39] : memref<61xf32, #tpu.memory_space<smem>>
    %234 = vector.broadcast %233 : f32 to vector<8x128xf32>
    %235 = arith.addf %232, %234 : vector<8x128xf32>
    %cst_21 = arith.constant 0.000000e+00 : f32
    %236 = vector.broadcast %cst_21 : f32 to vector<8x128xf32>
    %237 = arith.maximumf %235, %236 : vector<8x128xf32>
    %c59 = arith.constant 59 : index
    %238 = memref.load %arg1[%c59] : memref<61xf32, #tpu.memory_space<smem>>
    %239 = vector.broadcast %238 : f32 to vector<8x128xf32>
    %240 = arith.mulf %237, %239 : vector<8x128xf32>
    %241 = arith.addf %229, %240 : vector<8x128xf32>
    %c60 = arith.constant 60 : index
    %242 = memref.load %arg1[%c60] : memref<61xf32, #tpu.memory_space<smem>>
    %243 = vector.broadcast %242 : f32 to vector<8x128xf32>
    %244 = arith.addf %241, %243 : vector<8x128xf32>
    %c0_22 = arith.constant 0 : index
    %c0_23 = arith.constant 0 : index
    %245 = vector.load %arg3[%c0_22, %c0_23] : memref<8x128xf32, #tpu.memory_space<vmem>>, vector<8x128xf32>
    tpu.vector_store %arg3[%c0_22, %c0_23], %244 {strides = array<i32>} : memref<8x128xf32, #tpu.memory_space<vmem>>, vector<8x128xf32>,
    return
  }
  func.func @transform_0(%arg0: i32) -> i32 {
    %c0_i32 = arith.constant 0 : i32
    %c0_i32_0 = arith.constant 0 : i32
    return %c0_i32 : i32
  }
  func.func @transform_1(%arg0: i32) -> (i32, i32) {
    %c0_i32 = arith.constant 0 : i32
    %c0_i32_0 = arith.constant 0 : i32
    return %arg0, %c0_i32 : i32, i32
  }
  func.func @transform_2(%arg0: i32) -> (i32, i32) {
    %c0_i32 = arith.constant 0 : i32
    %c0_i32_0 = arith.constant 0 : i32
    return %arg0, %c0_i32 : i32, i32
  }
}

</mosaic_0001>

<bundles_post_ra>
// kernel: tpu_custom_call.1
= control target key start
LH: loop header
LB: loop body
LE: loop exit
PB: predicated region body
PF: predicated region fallthrough
CT: control target
= control target key end

     0   :  { %7 = vsyncpa [#allocation5], 0  ;;  %s511_s0 = inlined_call_operand.hbm [shape: f32[61], index: 0, kind: input, shape index: {}]   ;;  %s512_s1 = inlined_call_operand.hbm [shape: f32[8,128], index: 1, kind: input, shape index: {}]   ;;  %s513_s2 = inlined_call_operand.hbm [shape: f32[8,128], index: 2, kind: output, shape index: {}]  }
   0x1   :  { %8 = vsyncpa [#allocation3], 0 }
   0x2   :  { %9 = vsyncpa [#allocation4], 0  ;;  %s15_s11 = sshll.u32 %s511_s0, 4  ;;  %s24_s14 = sshll.u32 %s512_s1, 4  ;;  %s16_s11 = int_to_ptr.hbm [resolvable:$true] %s15_s11  ;;  %s25_s14 = int_to_ptr.hbm [resolvable:$true] %s24_s14 }
   0x3   :  { %s411_s15 = smov [#allocation2]   ;;  %s412_s16 = smov [#allocation6]  }
   0x4   :  { %18 = dma.hbm_to_smem %s16_s11, 16, %s411_s15, [#allocation5]  }
   0x5   :  { %s26_s17 = sshll.u32 %s412_s16, 4  ;;  %s27_s17 = int_to_ptr.vmem [resolvable:$true] %s26_s17 }
   0x6   :  { %29 = dma.hbm_to_vmem [thread:$0]  %s25_s14, 128, %s27_s17, [#allocation3]  }
   0x7   :  { %405 = dma.done.wait [#allocation5], 16  }
   0x8   :  { %406 = vsyncadd [#allocation5], 4294967280 }
   0x9   :  { %407 = dma.done.wait [#allocation3], 128  }
   0xa   :  { %408 = vsyncadd [#allocation3], 4294967168 }
   0xb   :  { %38 = sfence }
   0xc   :  { %s40_s18 = sld [smem:[#allocation2]]  ;;  %v435_v0 = vld [vmem:[#allocation6] sm:$0xff] }
   0xd   :  { %s282_s19 = sld [smem:[#allocation2 + $0x14]] }
   0xe   :  { %s283_s0 = sld [smem:[#allocation2 + $0x28]] }
   0xf   :  { %s284_s20 = sld [smem:[#allocation2 + $0x1]] }
  0x10   :  { %s285_s21 = sld [smem:[#allocation2 + $0x15]] }
  0x11   :  { %s286_s1 = sld [smem:[#allocation2 + $0x29]] }
  0x12   :  { %v41_v1 = vstv %s40_s18  ;;  %s287_s22 = sld [smem:[#allocation2 + $0x2]] }
  0x13   :  { %v42_v2 = vmul.f32 %v41_v1, %v435_v0  ;;  %v44_v3 = vstv %s282_s19  ;;  %s288_s23 = sld [smem:[#allocation2 + $0x16]] }
  0x14   :  { %s438_s24 = sld [smem:[#allocation2 + $0x2a]]  ;;  %v48_v9 = vstv %s283_s0 }
  0x15   :  { %v45_v4 = vadd.f32 %v44_v3, %v42_v2  ;;  %v52_v5 = vstv %s284_s20  ;;  %s290_s25 = sld [smem:[#allocation2 + $0x3]] }
  0x16   :  { %v53_v6 = vmul.f32 %v52_v5, %v435_v0  ;;  %v55_v7 = vstv %s285_s21  ;;  %s291_s26 = sld [smem:[#allocation2 + $0x17]] }
  0x17   :  { %v46_v8 = vmax.f32 %v45_v4, 0.0  ;;  %s441_s27 = sld [smem:[#allocation2 + $0x2b]]  ;;  %v59_v12 = vstv %s286_s1 }
  0x18   :  { %v56_v10 = vadd.f32 %v55_v7, %v53_v6  ;;  %v63_v11 = vstv %s287_s22  ;;  %s293_s28 = sld [smem:[#allocation2 + $0x4]] }
  0x19   :  { %v64_v13 = vmul.f32 %v63_v11, %v435_v0  ;;  %v66_v14 = vstv %s288_s23  ;;  %s294_s29 = sld [smem:[#allocation2 + $0x18]]  ;;  %v49_v15 = vmul.f32 %v48_v9, %v46_v8 }
  0x1a   :  { %v57_v16 = vmax.f32 %v56_v10, 0.0  ;;  %s444_s30 = sld [smem:[#allocation2 + $0x2c]]  ;;  %v70_v20 = vstv %s438_s24 }
  0x1b   :  { %v67_v17 = vadd.f32 %v66_v14, %v64_v13  ;;  %v74_v18 = vstv %s290_s25  ;;  %s296_s3 = sld [smem:[#allocation2 + $0x5]] }
  0x1c   :  { %v60_v19 = vmul.f32 %v59_v12, %v57_v16  ;;  %v75_v21 = vmul.f32 %v74_v18, %v435_v0  ;;  %v77_v22 = vstv %s291_s26  ;;  %s297_s4 = sld [smem:[#allocation2 + $0x19]] }
  0x1d   :  { %v68_v23 = vmax.f32 %v67_v17, 0.0  ;;  %s448_s5 = sld [smem:[#allocation2 + $0x2d]]  ;;  %v81_v28 = vstv %s441_s27 }
  0x1e   :  { %v61_v24 = vadd.f32 %v60_v19, %v49_v15  ;;  %v78_v25 = vadd.f32 %v77_v22, %v75_v21  ;;  %v85_v26 = vstv %s293_s28  ;;  %s299_s6 = sld [smem:[#allocation2 + $0x6]] }
  0x1f   :  { %v71_v27 = vmul.f32 %v70_v20, %v68_v23  ;;  %v86_v29 = vmul.f32 %v85_v26, %v435_v0  ;;  %v88_v30 = vstv %s294_s29  ;;  %s300_s7 = sld [smem:[#allocation2 + $0x1a]] }
  0x20   :  { %v79_v31 = vmax.f32 %v78_v25, 0.0  ;;  %s452_s8 = sld [smem:[#allocation2 + $0x2e]]  ;;  %v92_v36 = vstv %s444_s30 }
  0x21   :  { %v72_v32 = vadd.f32 %v71_v27, %v61_v24  ;;  %v89_v33 = vadd.f32 %v88_v30, %v86_v29  ;;  %v96_v34 = vstv %s296_s3  ;;  %s302_s9 = sld [smem:[#allocation2 + $0x7]] }
  0x22   :  { %v82_v35 = vmul.f32 %v81_v28, %v79_v31  ;;  %v97_v37 = vmul.f32 %v96_v34, %v435_v0  ;;  %v99_v38 = vstv %s297_s4  ;;  %s303_s10 = sld [smem:[#allocation2 + $0x1b]] }
  0x23   :  { %v90_v39 = vmax.f32 %v89_v33, 0.0  ;;  %s456_s11 = sld [smem:[#allocation2 + $0x2f]]  ;;  %v103_v44 = vstv %s448_s5 }
  0x24   :  { %v83_v40 = vadd.f32 %v82_v35, %v72_v32  ;;  %v100_v41 = vadd.f32 %v99_v38, %v97_v37  ;;  %v107_v42 = vstv %s299_s6  ;;  %s305_s12 = sld [smem:[#allocation2 + $0x8]] }
  0x25   :  { %v93_v43 = vmul.f32 %v92_v36, %v90_v39  ;;  %v108_v45 = vmul.f32 %v107_v42, %v435_v0  ;;  %v110_v46 = vstv %s300_s7  ;;  %s306_s13 = sld [smem:[#allocation2 + $0x1c]] }
  0x26   :  { %v101_v47 = vmax.f32 %v100_v41, 0.0  ;;  %s460_s14 = sld [smem:[#allocation2 + $0x30]]  ;;  %v114_v52 = vstv %s452_s8 }
  0x27   :  { %v94_v48 = vadd.f32 %v93_v43, %v83_v40  ;;  %v111_v49 = vadd.f32 %v110_v46, %v108_v45  ;;  %v118_v50 = vstv %s302_s9  ;;  %s308_s15 = sld [smem:[#allocation2 + $0x9]] }
  0x28   :  { %v104_v51 = vmul.f32 %v103_v44, %v101_v47  ;;  %v119_v53 = vmul.f32 %v118_v50, %v435_v0  ;;  %v121_v54 = vstv %s303_s10  ;;  %s309_s16 = sld [smem:[#allocation2 + $0x1d]] }
  0x29   :  { %v112_v55 = vmax.f32 %v111_v49, 0.0  ;;  %s464_s17 = sld [smem:[#allocation2 + $0x31]]  ;;  %v125_v60 = vstv %s456_s11 }
  0x2a   :  { %v105_v56 = vadd.f32 %v104_v51, %v94_v48  ;;  %v122_v57 = vadd.f32 %v121_v54, %v119_v53  ;;  %v129_v58 = vstv %s305_s12  ;;  %s311_s18 = sld [smem:[#allocation2 + $0xa]] }
  0x2b   :  { %v115_v59 = vmul.f32 %v114_v52, %v112_v55  ;;  %v130_v61 = vmul.f32 %v129_v58, %v435_v0  ;;  %v132_v62 = vstv %s306_s13  ;;  %s312_s19 = sld [smem:[#allocation2 + $0x1e]] }
  0x2c   :  { %v123_v63 = vmax.f32 %v122_v57, 0.0  ;;  %s468_s0 = sld [smem:[#allocation2 + $0x32]]  ;;  %v136_v5 = vstv %s460_s14 }
  0x2d   :  { %v116_v1 = vadd.f32 %v115_v59, %v105_v56  ;;  %v133_v2 = vadd.f32 %v132_v62, %v130_v61  ;;  %v140_v3 = vstv %s308_s15  ;;  %s314_s20 = sld [smem:[#allocation2 + $0xb]] }
  0x2e   :  { %v126_v4 = vmul.f32 %v125_v60, %v123_v63  ;;  %v141_v6 = vmul.f32 %v140_v3, %v435_v0  ;;  %v143_v7 = vstv %s309_s16  ;;  %s315_s21 = sld [smem:[#allocation2 + $0x1f]] }
  0x2f   :  { %v134_v8 = vmax.f32 %v133_v2, 0.0  ;;  %s472_s1 = sld [smem:[#allocation2 + $0x33]]  ;;  %v147_v13 = vstv %s464_s17 }
  0x30   :  { %v127_v9 = vadd.f32 %v126_v4, %v116_v1  ;;  %v144_v10 = vadd.f32 %v143_v7, %v141_v6  ;;  %v151_v11 = vstv %s311_s18  ;;  %s317_s22 = sld [smem:[#allocation2 + $0xc]] }
  0x31   :  { %v137_v12 = vmul.f32 %v136_v5, %v134_v8  ;;  %v152_v14 = vmul.f32 %v151_v11, %v435_v0  ;;  %v154_v15 = vstv %s312_s19  ;;  %s318_s23 = sld [smem:[#allocation2 + $0x20]]  ;;  %s413_s19 = smov [#allocation7]  }
  0x32   :  { %v145_v16 = vmax.f32 %v144_v10, 0.0  ;;  %s476_s24 = sld [smem:[#allocation2 + $0x34]]  ;;  %v158_v21 = vstv %s468_s0  ;;  %s269_s0 = sshll.u32 %s413_s19, 4  ;;  %s270_s0 = int_to_ptr.vmem [resolvable:$true] %s269_s0 }
  0x33   :  { %v138_v17 = vadd.f32 %v137_v12, %v127_v9  ;;  %v155_v18 = vadd.f32 %v154_v15, %v152_v14  ;;  %v162_v19 = vstv %s314_s20  ;;  %s320_s25 = sld [smem:[#allocation2 + $0xd]] }
  0x34   :  { %v148_v20 = vmul.f32 %v147_v13, %v145_v16  ;;  %v163_v22 = vmul.f32 %v162_v19, %v435_v0  ;;  %v165_v23 = vstv %s315_s21  ;;  %s321_s26 = sld [smem:[#allocation2 + $0x21]] }
  0x35   :  { %v156_v24 = vmax.f32 %v155_v18, 0.0  ;;  %s480_s27 = sld [smem:[#allocation2 + $0x35]]  ;;  %v169_v29 = vstv %s472_s1  ;;  %s271_s1 = sshll.u32 %s513_s2, 4  ;;  %s272_s1 = int_to_ptr.hbm [resolvable:$true] %s271_s1 }
  0x36   :  { %v149_v25 = vadd.f32 %v148_v20, %v138_v17  ;;  %v166_v26 = vadd.f32 %v165_v23, %v163_v22  ;;  %v173_v27 = vstv %s317_s22  ;;  %s323_s28 = sld [smem:[#allocation2 + $0xe]] }
  0x37   :  { %v159_v28 = vmul.f32 %v158_v21, %v156_v24  ;;  %v174_v30 = vmul.f32 %v173_v27, %v435_v0  ;;  %v176_v31 = vstv %s318_s23  ;;  %s324_s29 = sld [smem:[#allocation2 + $0x22]] }
  0x38   :  { %v167_v32 = vmax.f32 %v166_v26, 0.0  ;;  %s484_s30 = sld [smem:[#allocation2 + $0x36]]  ;;  %v180_v37 = vstv %s476_s24 }
  0x39   :  { %v160_v33 = vadd.f32 %v159_v28, %v149_v25  ;;  %v177_v34 = vadd.f32 %v176_v31, %v174_v30  ;;  %v184_v35 = vstv %s320_s25  ;;  %s326_s3 = sld [smem:[#allocation2 + $0xf]] }
  0x3a   :  { %v170_v36 = vmul.f32 %v169_v29, %v167_v32  ;;  %v185_v38 = vmul.f32 %v184_v35, %v435_v0  ;;  %v187_v39 = vstv %s321_s26  ;;  %s327_s4 = sld [smem:[#allocation2 + $0x23]] }
  0x3b   :  { %v178_v40 = vmax.f32 %v177_v34, 0.0  ;;  %s488_s5 = sld [smem:[#allocation2 + $0x37]]  ;;  %v191_v45 = vstv %s480_s27 }
  0x3c   :  { %v171_v41 = vadd.f32 %v170_v36, %v160_v33  ;;  %v188_v42 = vadd.f32 %v187_v39, %v185_v38  ;;  %v195_v43 = vstv %s323_s28  ;;  %s329_s6 = sld [smem:[#allocation2 + $0x10]] }
  0x3d   :  { %v181_v44 = vmul.f32 %v180_v37, %v178_v40  ;;  %v196_v46 = vmul.f32 %v195_v43, %v435_v0  ;;  %v198_v47 = vstv %s324_s29  ;;  %s330_s7 = sld [smem:[#allocation2 + $0x24]] }
  0x3e   :  { %v189_v48 = vmax.f32 %v188_v42, 0.0  ;;  %s492_s8 = sld [smem:[#allocation2 + $0x38]]  ;;  %v202_v53 = vstv %s484_s30 }
  0x3f   :  { %v182_v49 = vadd.f32 %v181_v44, %v171_v41  ;;  %v199_v50 = vadd.f32 %v198_v47, %v196_v46  ;;  %v206_v51 = vstv %s326_s3  ;;  %s332_s9 = sld [smem:[#allocation2 + $0x11]] }
  0x40   :  { %v192_v52 = vmul.f32 %v191_v45, %v189_v48  ;;  %v207_v54 = vmul.f32 %v206_v51, %v435_v0  ;;  %v209_v55 = vstv %s327_s4  ;;  %s333_s10 = sld [smem:[#allocation2 + $0x25]] }
  0x41   :  { %v200_v56 = vmax.f32 %v199_v50, 0.0  ;;  %s496_s11 = sld [smem:[#allocation2 + $0x39]]  ;;  %v213_v61 = vstv %s488_s5 }
  0x42   :  { %v193_v57 = vadd.f32 %v192_v52, %v182_v49  ;;  %v210_v58 = vadd.f32 %v209_v55, %v207_v54  ;;  %v217_v59 = vstv %s329_s6  ;;  %s335_s12 = sld [smem:[#allocation2 + $0x12]] }
  0x43   :  { %v203_v60 = vmul.f32 %v202_v53, %v200_v56  ;;  %v218_v62 = vmul.f32 %v217_v59, %v435_v0  ;;  %v220_v63 = vstv %s330_s7  ;;  %s336_s13 = sld [smem:[#allocation2 + $0x26]] }
  0x44   :  { %v211_v1 = vmax.f32 %v210_v58, 0.0  ;;  %s500_s14 = sld [smem:[#allocation2 + $0x3a]]  ;;  %v224_v6 = vstv %s492_s8 }
  0x45   :  { %v204_v2 = vadd.f32 %v203_v60, %v193_v57  ;;  %v221_v3 = vadd.f32 %v220_v63, %v218_v62  ;;  %v228_v4 = vstv %s332_s9  ;;  %s338_s15 = sld [smem:[#allocation2 + $0x13]] }
  0x46   :  { %v214_v5 = vmul.f32 %v213_v61, %v211_v1  ;;  %v229_v7 = vmul.f32 %v228_v4, %v435_v0  ;;  %v231_v8 = vstv %s333_s10  ;;  %s339_s16 = sld [smem:[#allocation2 + $0x27]] }
  0x47   :  { %v222_v9 = vmax.f32 %v221_v3, 0.0  ;;  %s340_s17 = sld [smem:[#allocation2 + $0x3b]]  ;;  %v235_v14 = vstv %s496_s11 }
  0x48   :  { %v215_v10 = vadd.f32 %v214_v5, %v204_v2  ;;  %v232_v11 = vadd.f32 %v231_v8, %v229_v7  ;;  %v239_v12 = vstv %s335_s12  ;;  %s341_s18 = sld [smem:[#allocation2 + $0x3c]] }
  0x49   :  { %v225_v13 = vmul.f32 %v224_v6, %v222_v9  ;;  %v240_v15 = vmul.f32 %v239_v12, %v435_v0  ;;  %v242_v16 = vstv %s336_s13 }
  0x4a   :  { %v233_v17 = vmax.f32 %v232_v11, 0.0  ;;  %v246_v22 = vstv %s500_s14 }
  0x4b   :  { %v226_v18 = vadd.f32 %v225_v13, %v215_v10  ;;  %v243_v19 = vadd.f32 %v242_v16, %v240_v15  ;;  %v250_v20 = vstv %s338_s15 }
  0x4c   :  { %v236_v21 = vmul.f32 %v235_v14, %v233_v17  ;;  %v251_v23 = vmul.f32 %v250_v20, %v435_v0  ;;  %v253_v24 = vstv %s339_s16 }
  0x4d   :  { %v244_v25 = vmax.f32 %v243_v19, 0.0  ;;  %v257_v29 = vstv %s340_s17 }
  0x4e   :  { %v237_v26 = vadd.f32 %v236_v21, %v226_v18  ;;  %v254_v27 = vadd.f32 %v253_v24, %v251_v23  ;;  %v261_v33 = vstv %s341_s18 }
  0x4f   :  { %v247_v28 = vmul.f32 %v246_v22, %v244_v25 }
  0x50   :  { %v255_v30 = vmax.f32 %v254_v27, 0.0 }
  0x51   :  { %v248_v31 = vadd.f32 %v247_v28, %v237_v26 }
  0x52   :  { %v258_v32 = vmul.f32 %v257_v29, %v255_v30 }
  0x54   :  { %v259_v34 = vadd.f32 %v258_v32, %v248_v31 }
  0x56   :  { %v262_v35 = vadd.f32 %v261_v33, %v259_v34 }
  0x58   :  { %263 = vst [vmem:[#allocation7] sm:$0xff] %v262_v35 }
  0x59   :  { %274 = dma.vmem_to_hbm [thread:$0]  %s270_s0, 128, %s272_s1, [#allocation4]  }
  0x5a   :  { %409 = dma.done.wait [#allocation4], 128  }
  0x5b   :  { %410 = vsyncadd [#allocation4], 4294967168 }
  0x5c   :  { %279 = vsyncpa [#allocation3], 1 }
  0x5d   :  { %280 = vsyncpa [#allocation4], 1 }
  0x5e   :  { %281 = vsyncpa [#allocation5], 1 }

</bundles_post_ra>
